<compile_context>
chip_gen: v6e
topology: v6e:2x2x1
jax: 0.10.0
libtpu: 0.0.40
codegen_flags: <defaults>
</compile_context>

<pallas_src>
import functools

import jax
import jax.numpy as jnp
from jax.experimental import pallas as pl
from jax.experimental.pallas import tpu as pltpu


def _self_attention_kernel(x_ref, wq_ref, bq_ref, wk_ref, bk_ref, wv_ref, bv_ref,
                           wo_ref, bo_ref, o_ref):
    # x_ref: (1, N, D) — one batch element per grid step (attention never mixes
    # batches, so a "parallel" batch grid axis is safe and feeds both v7x TCs).
    mxu_dtype = wq_ref.dtype            # f32 by default; bf16 if prepped that way
    x_in = x_ref[0]                     # (N, D)
    x_f32 = x_in.astype(jnp.float32)
    x_mxu = x_in.astype(mxu_dtype)

    # Three tile-aligned projections.  The softmax scale is pre-folded into
    # wq/bq at prep time, so no extra scalar multiply is needed here.
    q = jnp.dot(x_mxu, wq_ref[...], preferred_element_type=jnp.float32) + bq_ref[...]
    k = jnp.dot(x_mxu, wk_ref[...], preferred_element_type=jnp.float32) + bk_ref[...]
    v = jnp.dot(x_mxu, wv_ref[...], preferred_element_type=jnp.float32) + bv_ref[...]

    # Scores: contract the feature dim directly (no explicit k transpose, keeps
    # the work on the MXU and off the XLU).
    s = jnp.einsum('qd,kd->qk', q.astype(mxu_dtype), k.astype(mxu_dtype),
                   preferred_element_type=jnp.float32)                    # (N, N)

    # Numerically-stable softmax; all elementwise math in f32 (v5e has no bf16
    # VPU/EUP path).  Denominator reciprocal goes to the EUP slot.
    s = s - jnp.max(s, axis=-1, keepdims=True)
    p = jnp.exp(s)
    p = p * pl.reciprocal(jnp.sum(p, axis=-1, keepdims=True), approx=True)

    # Context, output projection, residual — all fused in this step.
    ctx = jnp.dot(p.astype(mxu_dtype), v.astype(mxu_dtype),
                  preferred_element_type=jnp.float32)                     # (N, D)
    y = jnp.dot(ctx.astype(mxu_dtype), wo_ref[...],
                preferred_element_type=jnp.float32) + bo_ref[...]
    o_ref[0] = (y + x_f32).astype(o_ref.dtype)


def prepare_self_attention_params(params, mxu_dtype=jnp.float32):
    """One-time weight prep (hoisted out of the per-call path).

    * PyTorch Linear weights (out, in) -> (in, out) for right-multiplication.
    * Softmax scale folded into the Q weight AND bias.
    * Biases reshaped to (1, D) rows.
    * Optionally cast weights to bf16 for full-rate MXU on v6e/v7x
      (accumulation in the kernel stays f32).
    """
    D = params["wq"].shape[0]
    scale = float(D) ** (-0.5)
    return dict(
        wq=(params["wq"].T * scale).astype(mxu_dtype),
        bq=(params["bq"] * scale).reshape(1, D).astype(jnp.float32),
        wk=params["wk"].T.astype(mxu_dtype),
        bk=params["bk"].reshape(1, D).astype(jnp.float32),
        wv=params["wv"].T.astype(mxu_dtype),
        bv=params["bv"].reshape(1, D).astype(jnp.float32),
        wo=params["wo"].T.astype(mxu_dtype),
        bo=params["bo"].reshape(1, D).astype(jnp.float32),
    )


@jax.jit
def self_attention_pallas(x, prepped):
    """x: (B, N, D).  prepped: output of prepare_self_attention_params."""
    B, N, D = x.shape

    return pl.pallas_call(
        _self_attention_kernel,
        out_shape=jax.ShapeDtypeStruct((B, N, D), x.dtype),
        grid_spec=pltpu.PrefetchScalarGridSpec(
            num_scalar_prefetch=0,
            grid=(B,),
            in_specs=[
                pl.BlockSpec((1, N, D), lambda b: (b, 0, 0)),   # x, per-batch tile
                pl.BlockSpec((D, D), lambda b: (0, 0)),         # wq (scale folded)
                pl.BlockSpec((1, D), lambda b: (0, 0)),         # bq (scale folded)
                pl.BlockSpec((D, D), lambda b: (0, 0)),         # wk
                pl.BlockSpec((1, D), lambda b: (0, 0)),         # bk
                pl.BlockSpec((D, D), lambda b: (0, 0)),         # wv
                pl.BlockSpec((1, D), lambda b: (0, 0)),         # bv
                pl.BlockSpec((D, D), lambda b: (0, 0)),         # wo
                pl.BlockSpec((1, D), lambda b: (0, 0)),         # bo
            ],
            out_specs=pl.BlockSpec((1, N, D), lambda b: (b, 0, 0)),
        ),
        compiler_params=pltpu.CompilerParams(
            dimension_semantics=("parallel",),      # batch axis -> both v7x TCs
            vmem_limit_bytes=32 * 1024 * 1024,      # explicit (v7x: 64 MiB phys)
        ),
    )(x, prepped["wq"], prepped["bq"], prepped["wk"], prepped["bk"],
      prepped["wv"], prepped["bv"], prepped["wo"], prepped["bo"])


def self_attention_ref(x, params):
    """Plain-JAX reference mirroring the PyTorch forward (eval mode)."""
    D = x.shape[-1]
    scale = float(D) ** (-0.5)
    q = x @ params["wq"].T + params["bq"]
    k = x @ params["wk"].T + params["bk"]
    v = x @ params["wv"].T + params["bv"]
    attn = jax.nn.softmax(q @ jnp.swapaxes(k, -2, -1) * scale, axis=-1)
    out = attn @ v
    out = out @ params["wo"].T + params["bo"]
    return out + x


if __name__ == "__main__":
    B, N, D = 2, 8, 32  # batch, seq, hidden

    key = jax.random.PRNGKey(0)
    keys = jax.random.split(key, 9)
    bound = 1.0 / (D ** 0.5)

    def init_w(k):
        return jax.random.uniform(k, (D, D), jnp.float32, -bound, bound)

    def init_b(k):
        return jax.random.uniform(k, (D,), jnp.float32, -bound, bound)

    params = {
        "wq": init_w(keys[0]), "bq": init_b(keys[1]),
        "wk": init_w(keys[2]), "bk": init_b(keys[3]),
        "wv": init_w(keys[4]), "bv": init_b(keys[5]),
        "wo": init_w(keys[6]), "bo": init_b(keys[7]),
    }
    x = jax.random.normal(keys[8], (B, N, D), jnp.float32)

    # Weight prep happens exactly once (model-init analogue), not per forward.
    prepped = jax.tree_util.tree_map(
        jax.block_until_ready, prepare_self_attention_params(params))

    out = jax.block_until_ready(self_attention_pallas(x, prepped))
    ref = jax.block_until_ready(self_attention_ref(x, params))

    assert out.shape == (B, N, D)
    # Slightly looser tolerance: softmax denominator uses the EUP approximate
    # reciprocal (rel err ~1e-4); everything else accumulates in f32.
    assert jnp.allclose(out, ref, atol=2e-3, rtol=2e-3), "mismatch vs reference"
    print("KERNEL_OK")
</pallas_src>

<mosaic_0001>
module attributes {stable_mosaic.version = 11 : i64} {
  func.func @_self_attention_kernel(%arg0: i32, %arg1: memref<1x8x32xf32, #tpu.memory_space<vmem>>, %arg2: memref<32x32xf32, #tpu.memory_space<vmem>>, %arg3: memref<1x32xf32, #tpu.memory_space<vmem>>, %arg4: memref<32x32xf32, #tpu.memory_space<vmem>>, %arg5: memref<1x32xf32, #tpu.memory_space<vmem>>, %arg6: memref<32x32xf32, #tpu.memory_space<vmem>>, %arg7: memref<1x32xf32, #tpu.memory_space<vmem>>, %arg8: memref<32x32xf32, #tpu.memory_space<vmem>>, %arg9: memref<1x32xf32, #tpu.memory_space<vmem>>, %arg10: memref<1x8x32xf32, #tpu.memory_space<vmem>>) attributes {dimension_semantics = [#tpu.dimension_semantics<parallel>], iteration_bounds = array<i64: 2>, scalar_prefetch = 0 : i64, scratch_operands = 0 : i64, tpu.core_type = #tpu.core_type<tc>, window_params = [{transform_indices = @transform_0, window_bounds = array<i64: 1, 8, 32>}, {pipeline_mode = #tpu.pipeline_mode<synchronous>, transform_indices = @transform_1, window_bounds = array<i64: 32, 32>}, {pipeline_mode = #tpu.pipeline_mode<synchronous>, transform_indices = @transform_2, window_bounds = array<i64: 1, 32>}, {pipeline_mode = #tpu.pipeline_mode<synchronous>, transform_indices = @transform_3, window_bounds = array<i64: 32, 32>}, {pipeline_mode = #tpu.pipeline_mode<synchronous>, transform_indices = @transform_4, window_bounds = array<i64: 1, 32>}, {pipeline_mode = #tpu.pipeline_mode<synchronous>, transform_indices = @transform_5, window_bounds = array<i64: 32, 32>}, {pipeline_mode = #tpu.pipeline_mode<synchronous>, transform_indices = @transform_6, window_bounds = array<i64: 1, 32>}, {pipeline_mode = #tpu.pipeline_mode<synchronous>, transform_indices = @transform_7, window_bounds = array<i64: 32, 32>}, {pipeline_mode = #tpu.pipeline_mode<synchronous>, transform_indices = @transform_8, window_bounds = array<i64: 1, 32>}, {transform_indices = @transform_9, window_bounds = array<i64: 1, 8, 32>}]} {
    %c0 = arith.constant 0 : index
    %c0_0 = arith.constant 0 : index
    %c0_1 = arith.constant 0 : index
    %0 = vector.load %arg1[%c0, %c0_0, %c0_1] : memref<1x8x32xf32, #tpu.memory_space<vmem>>, vector<1x8x32xf32>
    %1 = vector.shape_cast %0 : vector<1x8x32xf32> to vector<8x32xf32>
    %c0_2 = arith.constant 0 : index
    %c0_3 = arith.constant 0 : index
    %2 = vector.load %arg2[%c0_2, %c0_3] : memref<32x32xf32, #tpu.memory_space<vmem>>, vector<32x32xf32>
    %cst = arith.constant dense<0.000000e+00> : vector<8x32xf32>
    %3 = tpu.matmul %1, %2, %cst {dimension_numbers = #tpu.dot_dimension_numbers<[1], [0], [0], [1], [0, 0, 1, 1], [], []>} : vector<8x32xf32>, vector<32x32xf32>, vector<8x32xf32> -> vector<8x32xf32>
    %c0_4 = arith.constant 0 : index
    %c0_5 = arith.constant 0 : index
    %4 = vector.load %arg3[%c0_4, %c0_5] : memref<1x32xf32, #tpu.memory_space<vmem>>, vector<1x32xf32>
    %5 = vector.broadcast %4 : vector<1x32xf32> to vector<8x32xf32>
    %6 = arith.addf %3, %5 : vector<8x32xf32>
    %c0_6 = arith.constant 0 : index
    %c0_7 = arith.constant 0 : index
    %7 = vector.load %arg4[%c0_6, %c0_7] : memref<32x32xf32, #tpu.memory_space<vmem>>, vector<32x32xf32>
    %cst_8 = arith.constant dense<0.000000e+00> : vector<8x32xf32>
    %8 = tpu.matmul %1, %7, %cst_8 {dimension_numbers = #tpu.dot_dimension_numbers<[1], [0], [0], [1], [0, 0, 1, 1], [], []>} : vector<8x32xf32>, vector<32x32xf32>, vector<8x32xf32> -> vector<8x32xf32>
    %c0_9 = arith.constant 0 : index
    %c0_10 = arith.constant 0 : index
    %9 = vector.load %arg5[%c0_9, %c0_10] : memref<1x32xf32, #tpu.memory_space<vmem>>, vector<1x32xf32>
    %10 = vector.broadcast %9 : vector<1x32xf32> to vector<8x32xf32>
    %11 = arith.addf %8, %10 : vector<8x32xf32>
    %c0_11 = arith.constant 0 : index
    %c0_12 = arith.constant 0 : index
    %12 = vector.load %arg6[%c0_11, %c0_12] : memref<32x32xf32, #tpu.memory_space<vmem>>, vector<32x32xf32>
    %cst_13 = arith.constant dense<0.000000e+00> : vector<8x32xf32>
    %13 = tpu.matmul %1, %12, %cst_13 {dimension_numbers = #tpu.dot_dimension_numbers<[1], [0], [0], [1], [0, 0, 1, 1], [], []>} : vector<8x32xf32>, vector<32x32xf32>, vector<8x32xf32> -> vector<8x32xf32>
    %c0_14 = arith.constant 0 : index
    %c0_15 = arith.constant 0 : index
    %14 = vector.load %arg7[%c0_14, %c0_15] : memref<1x32xf32, #tpu.memory_space<vmem>>, vector<1x32xf32>
    %15 = vector.broadcast %14 : vector<1x32xf32> to vector<8x32xf32>
    %16 = arith.addf %13, %15 : vector<8x32xf32>
    "tpu.trace_start"() <{level = 10 : i32, message = "qd,kd->qk"}> : () -> ()
    %cst_16 = arith.constant dense<0.000000e+00> : vector<8x8xf32>
    %17 = tpu.matmul %6, %11, %cst_16 {dimension_numbers = #tpu.dot_dimension_numbers<[1], [1], [0], [0], [0, 0, 1, 0], [], []>} : vector<8x32xf32>, vector<8x32xf32>, vector<8x8xf32> -> vector<8x8xf32>
    "tpu.trace_stop"() : () -> ()
    %cst_17 = arith.constant dense<0xFF800000> : vector<8xf32>
    %18 = vector.multi_reduction <maximumf>, %17, %cst_17 [1] : vector<8x8xf32> to vector<8xf32>
    %19 = vector.shape_cast %18 : vector<8xf32> to vector<8x1xf32>
    %20 = vector.broadcast %19 : vector<8x1xf32> to vector<8x8xf32>
    %21 = arith.subf %17, %20 : vector<8x8xf32>
    %22 = math.exp %21 : vector<8x8xf32>
    %cst_18 = arith.constant dense<0.000000e+00> : vector<8xf32>
    %23 = vector.multi_reduction <add>, %22, %cst_18 [1] : vector<8x8xf32> to vector<8xf32>
    %24 = vector.shape_cast %23 : vector<8xf32> to vector<8x1xf32>
    %25 = tpu.reciprocal %24 {approx = true} : vector<8x1xf32> -> vector<8x1xf32>
    %26 = vector.broadcast %25 : vector<8x1xf32> to vector<8x8xf32>
    %27 = arith.mulf %22, %26 : vector<8x8xf32>
    %cst_19 = arith.constant dense<0.000000e+00> : vector<8x32xf32>
    %28 = tpu.matmul %27, %16, %cst_19 {dimension_numbers = #tpu.dot_dimension_numbers<[1], [0], [0], [1], [0, 0, 1, 1], [], []>} : vector<8x8xf32>, vector<8x32xf32>, vector<8x32xf32> -> vector<8x32xf32>
    %c0_20 = arith.constant 0 : index
    %c0_21 = arith.constant 0 : index
    %29 = vector.load %arg8[%c0_20, %c0_21] : memref<32x32xf32, #tpu.memory_space<vmem>>, vector<32x32xf32>
    %cst_22 = arith.constant dense<0.000000e+00> : vector<8x32xf32>
    %30 = tpu.matmul %28, %29, %cst_22 {dimension_numbers = #tpu.dot_dimension_numbers<[1], [0], [0], [1], [0, 0, 1, 1], [], []>} : vector<8x32xf32>, vector<32x32xf32>, vector<8x32xf32> -> vector<8x32xf32>
    %c0_23 = arith.constant 0 : index
    %c0_24 = arith.constant 0 : index
    %31 = vector.load %arg9[%c0_23, %c0_24] : memref<1x32xf32, #tpu.memory_space<vmem>>, vector<1x32xf32>
    %32 = vector.broadcast %31 : vector<1x32xf32> to vector<8x32xf32>
    %33 = arith.addf %30, %32 : vector<8x32xf32>
    %34 = arith.addf %33, %1 : vector<8x32xf32>
    %c0_25 = arith.constant 0 : index
    %c0_26 = arith.constant 0 : index
    %c0_27 = arith.constant 0 : index
    %35 = vector.load %arg10[%c0_25, %c0_26, %c0_27] : memref<1x8x32xf32, #tpu.memory_space<vmem>>, vector<1x8x32xf32>
    %36 = vector.shape_cast %35 : vector<1x8x32xf32> to vector<8x32xf32>
    %37 = vector.shape_cast %34 : vector<8x32xf32> to vector<1x8x32xf32>
    tpu.vector_store %arg10[%c0_25, %c0_26, %c0_27], %37 {strides = array<i32>} : memref<1x8x32xf32, #tpu.memory_space<vmem>>, vector<1x8x32xf32>,
    return
  }
  func.func @transform_0(%arg0: i32) -> (i32, i32, i32) {
    %c0_i32 = arith.constant 0 : i32
    %c0_i32_0 = arith.constant 0 : i32
    %c0_i32_1 = arith.constant 0 : i32
    return %arg0, %c0_i32, %c0_i32_0 : i32, i32, i32
  }
  func.func @transform_1(%arg0: i32) -> (i32, i32) {
    %c0_i32 = arith.constant 0 : i32
    %c0_i32_0 = arith.constant 0 : i32
    %c0_i32_1 = arith.constant 0 : i32
    return %c0_i32, %c0_i32_0 : i32, i32
  }
  func.func @transform_2(%arg0: i32) -> (i32, i32) {
    %c0_i32 = arith.constant 0 : i32
    %c0_i32_0 = arith.constant 0 : i32
    %c0_i32_1 = arith.constant 0 : i32
    return %c0_i32, %c0_i32_0 : i32, i32
  }
  func.func @transform_3(%arg0: i32) -> (i32, i32) {
    %c0_i32 = arith.constant 0 : i32
    %c0_i32_0 = arith.constant 0 : i32
    %c0_i32_1 = arith.constant 0 : i32
    return %c0_i32, %c0_i32_0 : i32, i32
  }
  func.func @transform_4(%arg0: i32) -> (i32, i32) {
    %c0_i32 = arith.constant 0 : i32
    %c0_i32_0 = arith.constant 0 : i32
    %c0_i32_1 = arith.constant 0 : i32
    return %c0_i32, %c0_i32_0 : i32, i32
  }
  func.func @transform_5(%arg0: i32) -> (i32, i32) {
    %c0_i32 = arith.constant 0 : i32
    %c0_i32_0 = arith.constant 0 : i32
    %c0_i32_1 = arith.constant 0 : i32
    return %c0_i32, %c0_i32_0 : i32, i32
  }
  func.func @transform_6(%arg0: i32) -> (i32, i32) {
    %c0_i32 = arith.constant 0 : i32
    %c0_i32_0 = arith.constant 0 : i32
    %c0_i32_1 = arith.constant 0 : i32
    return %c0_i32, %c0_i32_0 : i32, i32
  }
  func.func @transform_7(%arg0: i32) -> (i32, i32) {
    %c0_i32 = arith.constant 0 : i32
    %c0_i32_0 = arith.constant 0 : i32
    %c0_i32_1 = arith.constant 0 : i32
    return %c0_i32, %c0_i32_0 : i32, i32
  }
  func.func @transform_8(%arg0: i32) -> (i32, i32) {
    %c0_i32 = arith.constant 0 : i32
    %c0_i32_0 = arith.constant 0 : i32
    %c0_i32_1 = arith.constant 0 : i32
    return %c0_i32, %c0_i32_0 : i32, i32
  }
  func.func @transform_9(%arg0: i32) -> (i32, i32, i32) {
    %c0_i32 = arith.constant 0 : i32
    %c0_i32_0 = arith.constant 0 : i32
    %c0_i32_1 = arith.constant 0 : i32
    return %arg0, %c0_i32, %c0_i32_0 : i32, i32, i32
  }
}

</mosaic_0001>

<bundles_post_ra>
// kernel: self_attention_pallas.1
= control target key start
LH: loop header
LB: loop body
LE: loop exit
PB: predicated region body
PF: predicated region fallthrough
CT: control target
= control target key end

     0   :  { %s1834_s0 = inlined_call_operand.hbm [shape: f32[2,8,32], index: 0, kind: input, shape index: {}]   ;;  %s1835_s1 = inlined_call_operand.hbm [shape: f32[32,32], index: 1, kind: input, shape index: {}]   ;;  %s1836_s2 = inlined_call_operand.vmem [shape: f32[1,32], index: 2, kind: input, shape index: {}]   ;;  %s1837_s3 = inlined_call_operand.hbm [shape: f32[32,32], index: 3, kind: input, shape index: {}]   ;;  %s1838_s4 = inlined_call_operand.hbm [shape: f32[1,32], index: 4, kind: input, shape index: {}]   ;;  %s1839_s5 = inlined_call_operand.hbm [shape: f32[32,32], index: 5, kind: input, shape index: {}]   ;;  %s1840_s6 = inlined_call_operand.vmem [shape: f32[1,32], index: 6, kind: input, shape index: {}]   ;;  %s1841_s7 = inlined_call_operand.hbm [shape: f32[32,32], index: 7, kind: input, shape index: {}]   ;;  %s1842_s8 = inlined_call_operand.vmem [shape: f32[1,32], index: 8, kind: input, shape index: {}]   ;;  %s1843_s9 = inlined_call_operand.hbm [shape: f32[2,8,32], index: 9, kind: output, shape index: {}]  }
   0x1   :  { %1848 = sst [smem:[#allocation19_spill]] %s1835_s1 }
   0x2   :  { %1849 = sst [smem:[#allocation20_spill]] %s1837_s3 }
   0x3   :  { %1850 = sst [smem:[#allocation21_spill]] %s1838_s4 }
   0x4   :  { %1851 = sst [smem:[#allocation22_spill]] %s1839_s5 }
   0x5   :  { %14 = vsyncpa [#allocation3], 0 }
   0x6   :  { %16 = vsyncpa [#allocation3 + $0x1], 0 }
   0x7   :  { %17 = vsyncpa [#allocation6], 0 }
   0x8   :  { %18 = vsyncpa [#allocation9], 0 }
   0x9   :  { %19 = vsyncpa [#allocation12], 0 }
   0xa   :  { %20 = vsyncpa [#allocation4], 0 }
   0xb   :  { %22 = vsyncpa [#allocation4 + $0x1], 0  ;;  %s1559_s30 = smov 0   ;;  %s1561_s10 = smov 0  }
   0xc   :  { %s1563_s11 = smov 0   ;;  %s1565_s12 = smov 0  }
   0xd LB: > { %s1498_s13 = smov [#allocation5]   ;;  %s1580_s15 = sadd.s32 4294967295, %s1496_s12   ;;  %s1496_s12 = sphi %s1565_s12, %s1877_s12   ;;  %s1492_s11 = sphi %s1563_s11, %s1876_s11   ;;  %s1488_s10 = sphi %s1561_s10, %s1875_s10   ;;  %s1484_s30 = sphi %s1559_s30, %s1874_s30  }
   0xe   : > { %s265_s14 = sshll.u32 %s1498_s13, 4  ;;  %p1047_p0 = scmp.ge.s32.totalorder %s1496_s12, 1  ;;  %s266_s14 = int_to_ptr.vmem [resolvable:$true] %s265_s14 }
   0xf   : > { %p1844_p1 = scmp.eq.s32.totalorder %s1580_s15, 0  ;;  %p253_p2 = scmp.lt.s32.totalorder %s1496_s12, 3 }
  0x10   : > { %s1499_s17 = smov [#allocation8]   ;;  %s1500_s20 = smov [#allocation7]  }
  0x11   : > { %p1585_p3 = pnand %p1047_p0, %p253_p2  ;;  %s295_s18 = sshll.u32 %s1499_s17, 4  ;;  %s296_s18 = int_to_ptr.vmem [resolvable:$true] %s295_s18 }
  0x12   : > { %s281_s21 = sshll.u32 %s1500_s20, 4  ;;  %s1273_s23 = scalar_lea.vmem %s266_s14, 512  ;;  %s1598_s21 = int_to_ptr.vmem [resolvable:$true] %s281_s21 }
  0x13   : > { %s1852_s16 = scalar_select %p1585_p3, 1, 0 }
  0x14   : > { %p1181_p5 = pneg %p1585_p3  ;;  %p1274_p8 = scmp.ne.s32.totalorder %s266_s14, %s1273_s23 }
  0x15   : > { %p1281_p11 = scmp.lt.s32.totalorder %s266_s14, %s266_s14  ;;  %p1282_p12 = scmp.lt.s32.totalorder %s1273_s23, %s1273_s23 }
  0x16   : > { %p1594_p6 = pnand %p1181_p5, %p1844_p1 }
  0x17   : > { %p1283_p13 = por %p1282_p12, %p1281_p11 }
  0x18   : > { %p1602_p7 = pneg %p1594_p6 }
  0x1a   : > { %p1276_p9 = pnand %p1274_p8, %p1602_p7 }
  0x1c   : > { %p1277_p10 = pneg %p1276_p9 }
  0x1e   : > { %p1284_p0 = pnand %p1283_p13, %p1277_p10 }
  0x20   : > { %1287 = shalt.err (!%p1284_p0)
}
  0x21   : > { %s1501_s24 = smov 128   ;;  %s1502_s25 = smov 8  }
  0x22   : > { %s1855_s1 = sld [smem:[#allocation19_spill]]  ;;  %s1299_s28 = scalar_lea.vmem %s296_s18, 16 }
  0x23   : > { %p1300_p2 = scmp.ne.s32.totalorder %s296_s18, %s1299_s28  ;;  %s1306_s29 = scalar_lea.vmem %s296_s18, 32 }
  0x24   : > { %p1307_p9 = scmp.lt.s32.totalorder %s296_s18, %s296_s18  ;;  %p1308_p10 = scmp.lt.s32.totalorder %s1306_s29, %s1299_s28 }
  0x25   : > { %p1302_p5 = pnand %p1300_p2, %p1602_p7 }
  0x26   : > { %p1309_p11 = por %p1308_p10, %p1307_p9 }
  0x27   : > { %p1303_p8 = pneg %p1302_p5 }
  0x28   : > { %1184 = dma.hbm_to_vmem [thread:$0]  (!%p1594_p6), %s1855_s1, 512, %s266_s14, [#allocation6], %s1501_s24, %s1501_s24, %s1502_s25  }
  0x29   : > { %p1310_p12 = pnand %p1309_p11, %p1303_p8 }
  0x2b   : > { %1313 = shalt.err (!%p1310_p12)
}
  0x2c   : > { %s1856_s4 = sld [smem:[#allocation21_spill]]  ;;  %s1325_s14 = scalar_lea.vmem %s1598_s21, 512 }
  0x2d   : > { %p1326_p13 = scmp.ne.s32.totalorder %s1598_s21, %s1325_s14  ;;  %p1333_p5 = scmp.lt.s32.totalorder %s1598_s21, %s1598_s21 }
  0x2e   : > { %p1334_p9 = scmp.lt.s32.totalorder %s1325_s14, %s1325_s14 }
  0x2f   : > { %p1328_p0 = pnand %p1326_p13, %p1602_p7 }
  0x30   : > { %p1335_p8 = por %p1334_p9, %p1333_p5 }
  0x31   : > { %p1329_p2 = pneg %p1328_p0 }
  0x32   : > { %1190 = dma.hbm_to_vmem [thread:$0]  (!%p1594_p6), %s1856_s4, 16, %s296_s18, [#allocation9]  }
  0x33   : > { %p1336_p10 = pnand %p1335_p8, %p1329_p2 }
  0x35   : > { %1339 = shalt.err (!%p1336_p10)
}
  0x36   : > { %s1857_s3 = sld [smem:[#allocation20_spill]]  ;;  %s1503_s18 = smov [#allocation10]  }
  0x37   : > { %s305_s26 = sshll.u32 %s1503_s18, 4  ;;  %s1504_s27 = smov [#allocation11]   ;;  %s306_s26 = int_to_ptr.vmem [resolvable:$true] %s305_s26 }
  0x38   : > { %s321_s28 = sshll.u32 %s1504_s27, 4  ;;  %s1351_s29 = scalar_lea.vmem %s306_s26, 512  ;;  %s322_s28 = int_to_ptr.vmem [resolvable:$true] %s321_s28 }
  0x39   : > { %p1352_p11 = scmp.ne.s32.totalorder %s306_s26, %s1351_s29  ;;  %p1359_p0 = scmp.lt.s32.totalorder %s306_s26, %s306_s26 }
  0x3a   : > { %p1360_p2 = scmp.lt.s32.totalorder %s1351_s29, %s1351_s29 }
  0x3b   : > { %p1354_p12 = pnand %p1352_p11, %p1602_p7 }
  0x3c   : > { %1187 = dma.hbm_to_vmem [thread:$0]  (!%p1594_p6), %s1857_s3, 512, %s1598_s21, [#allocation6], %s1501_s24, %s1501_s24, %s1502_s25  }
  0x3d   : > { %p1355_p13 = pneg %p1354_p12  ;;  %p1361_p5 = por %p1360_p2, %p1359_p0 }
  0x3f   : > { %p1362_p9 = pnand %p1361_p5, %p1355_p13 }
  0x41   : > { %1365 = shalt.err (!%p1362_p9)
}
  0x42   : > { %s1858_s5 = sld [smem:[#allocation22_spill]]  ;;  %s1377_s17 = scalar_lea.vmem %s322_s28, 512 }
  0x43   : > { %p1378_p8 = scmp.ne.s32.totalorder %s322_s28, %s1377_s17  ;;  %p1385_p12 = scmp.lt.s32.totalorder %s322_s28, %s322_s28 }
  0x44   : > { %p1386_p0 = scmp.lt.s32.totalorder %s1377_s17, %s1377_s17 }
  0x45   : > { %p1380_p10 = pnand %p1378_p8, %p1602_p7 }
  0x46   : > { %p1387_p13 = por %p1386_p0, %p1385_p12 }
  0x47   : > { %p1381_p11 = pneg %p1380_p10 }
  0x48   : > { %1193 = dma.hbm_to_vmem [thread:$0]  (!%p1594_p6), %s1858_s5, 512, %s306_s26, [#allocation9], %s1501_s24, %s1501_s24, %s1502_s25  }
  0x49   : > { %p1388_p2 = pnand %p1387_p13, %p1381_p11 }
  0x4b   : > { %1391 = shalt.err (!%p1388_p2)
}
  0x4c   : > { %1196 = dma.hbm_to_vmem [thread:$0]  (!%p1594_p6), %s1841_s7, 512, %s322_s28, [#allocation12], %s1501_s24, %s1501_s24, %s1502_s25  }
  0x4d   : > { %s1046_s19 = sadd.s32 4294967294, %s1496_s12   ;;  %s1660_s22 = sadd.s32 1, %s1496_s12  }
  0x4e   : > { %s35_s23 = sadd.s32 1, %s1492_s11  ;;  %s32_s18 = ssub.s32 %s1496_s12, %s1660_s22 }
  0x4f   : > { %p42_p7 = scmp.ne.s32.totalorder %s1492_s11, %s1488_s10  ;;  %p33_p5 = scmp.eq.s32.totalorder %s32_s18, 0 }
  0x50   : > { %p43_p9 = scmp.eq.s32.totalorder %s1496_s12, 0  ;;  %p48_p8 = scmp.ne.s32.totalorder %s1488_s10, %s1484_s30 }
  0x51   : > { %p240_p10 = scmp.eq.s32.totalorder %s1580_s15, 1  ;;  %p246_p0 = scmp.eq.s32.totalorder %s1046_s19, 1 }
  0x52   : > { %s1672_s26 = scalar_select %p33_p5, %s1492_s11, %s35_s23  }
  0x53   : > { %p44_p11 = por %p43_p9, %p42_p7  ;;  %p1676_p12 = por %p1844_p1, %p48_p8 }
  0x54   : > { %p1680_p6 = por %p240_p10, %p42_p7  ;;  %p1210_p13 = scmp.lt.s32.totalorder %s1496_s12, 2 }
  0x55   : > { %s1859_s27 = scalar_select %p1676_p12, 1, 0 }
  0x56   : > { %s1860_s24 = scalar_select %p1680_p6, 1, 0 }
  0x57   : > { %s338_s25 = sand.u32 1, %s1492_s11   ;;  %p1686_p2 = por %p246_p0, %p48_p8 }
  0x58   : > { %s1054_s29 = sshll.u32 %s338_s25, 3  ;;  %s1055_s21 = sshll.u32 %s1496_s12, 7 }
  0x59   : > { %s1861_s28 = scalar_select %p1686_p2, 1, 0 }
  0x5a   : > { %s1694_s14 = scalar_lea.hbm %s1834_s0, %s1055_s21  ;;  %s342_s20 = scalar_lea.vmem [#allocation2], %s1054_s29 }
  0x5b   : > { %s349_s23 = sshll.u32 %s342_s20, 4  ;;  %p1696_p7 = pnand %p1210_p13, %p44_p11  ;;  %s350_s23 = int_to_ptr.vmem [resolvable:$true] %s349_s23 }
  0x5c   : > { %s339_s18 = scalar_lea.sflag [#allocation3], %s338_s25  ;;  %s1392_s1 = scalar_lea.hbm %s1694_s14, 128 }
  0x5d   : > { %p1393_p5 = scmp.ne.s32.totalorder %s1694_s14, %s1392_s1  ;;  %p1394_p9 = pneg %p1696_p7 }
  0x5e   : > { %s1397_s17 = scalar_lea.hbm %s1834_s0, 256  ;;  %p1398_p11 = scmp.lt.s32.totalorder %s1694_s14, %s1834_s0 }
  0x5f   : > { %p1395_p8 = pnand %p1394_p9, %p1393_p5  ;;  %p1399_p0 = scmp.lt.s32.totalorder %s1397_s17, %s1392_s1 }
  0x61   : > { %p1396_p10 = pneg %p1395_p8  ;;  %p1400_p13 = por %p1399_p0, %p1398_p11 }
  0x63   : > { %p1401_p4 = pnand %p1400_p13, %p1396_p10 }
  0x65   : > { %1404 = shalt.err (!%p1401_p4)
}
  0x66   : > { %s1405_s20 = scalar_lea.vmem %s350_s23, 128  ;;  %s1505_s25 = smov [#allocation2]  }
  0x67   : > { %p1406_p1 = scmp.ne.s32.totalorder %s350_s23, %s1405_s20  ;;  %s1410_s4 = sshll.u32 %s1505_s25, 4  ;;  %s1411_s4 = int_to_ptr.vmem [resolvable:$false] %s1410_s4 }
  0x68   : > { %s1412_s5 = scalar_lea.vmem %s1411_s4, 256  ;;  %p1413_p5 = scmp.lt.s32.totalorder %s350_s23, %s1411_s4 }
  0x69   : > { %p1408_p2 = pnand %p1406_p1, %p1394_p9  ;;  %p1414_p8 = scmp.lt.s32.totalorder %s1412_s5, %s1405_s20 }
  0x6b   : > { %p1409_p6 = pneg %p1408_p2  ;;  %p1415_p12 = por %p1414_p8, %p1413_p5 }
  0x6d   : > { %p1416_p3 = pnand %p1415_p12, %p1409_p6 }
  0x6f   : > { %1419 = shalt.err (!%p1416_p3)
}
  0x70   : > { %1200 = dma.hbm_to_vmem [thread:$0]  (!%p1696_p7), %s1694_s14, 128, %s350_s23, %s339_s18  }
  0x71   : > { %p1863_p10 = scmp.ne.s32.totalorder %s1852_s16, 0 }
  0x72   : > { %s1717_s1 = sand.u32 (!%p1863_p10), 1, %s1488_s10   ;;  %p1864_p1 = scmp.ne.s32.totalorder (!%p1863_p10), %s1859_s27, 0 }
  0x73   : > { %358 = sbr.rel (%p1863_p10) target bundleno = 1246 (0x4de), region = 56  ;;  %s1057_s3 = sshll.u32 (!%p1863_p10), %s1717_s1, 3 }
  0x74   : > { %s361_s4 = scalar_lea.sflag (!%p1863_p10), [#allocation3], %s1717_s1  ;;  %s1723_s5 = scalar_lea.vmem (!%p1863_p10), [#allocation2], %s1057_s3 }
  0x78   : > { %1463 = dma.done.wait (%p1864_p1), %s361_s4, 128  }
  0x79   : > { %1465 = vsyncadd (%p1864_p1), %s361_s4, 4294967168  ;;  %p1865_p3 = scmp.eq.s32.totalorder %s1580_s15, 0 }
  0x7b   : > { %1467 = dma.done.wait (%p1865_p3), [#allocation6], 1024   ;;  %p1866_p4 = pmov %p1865_p3 }
  0x7c   : > { %p1867_p12 = pmov %p1865_p3 }
  0x7d   : > { %1469 = vsyncadd (%p1866_p4), [#allocation6], 4294966272 }
  0x7e   : > { %1471 = dma.done.wait (%p1867_p12), [#allocation9], 528   ;;  %p1868_p6 = pmov %p1865_p3 }
  0x7f   : > { %p1869_p2 = pmov %p1865_p3 }
  0x80   : > { %1473 = vsyncadd (%p1868_p6), [#allocation9], 4294966768 }
  0x81   : > { %1475 = dma.done.wait (%p1869_p2), [#allocation12], 512   ;;  %p1870_p7 = pmov %p1869_p2 }
  0x82   : > { %v1506_v0 = vmov 0.0   ;;  %vm1507_vm0 = vmmov 0   ;;  %v508_v1 = vld [vmem:[#allocation7 + $0x18] sm:$0xff]  ;;  %v507_v3 = vld [vmem:[#allocation7 + $0x10] sm:$0xff]  ;;  %v506_v5 = vld [vmem:[#allocation7 + $0x8] sm:$0xff]  ;;  %vm431_vm1 = vcmask 261120  }
  0x83   : > { %1477 = vsyncadd (%p1870_p7), [#allocation12], 4294966784  ;;  %1114 = vmatprep.subr.mxu1 %v1506_v0  ;;  %1103 = vmatprep.subr.mxu0 %v1506_v0  ;;  %v423_v2 = vld [vmem:[#allocation5 + $0x18] sm:$0xff]  ;;  %v422_v4 = vld [vmem:[#allocation5 + $0x10] sm:$0xff]  ;;  %vm743_vm2 = vcmask 64512   ;;  %s1076_s21 = sshll.u32 %s1580_s15, 7 }
  0x84   : > { %1122 = vmatprep.mubr.msk.f32.mxu1 %vm1507_vm0, %v1506_v0  ;;  %1111 = vmatprep.mubr.msk.f32.mxu0 %vm1507_vm0, %v1506_v0  ;;  %v421_v6 = vld [vmem:[#allocation5 + $0x8] sm:$0xff]  ;;  %v505_v7 = vld [vmem:[#allocation7] sm:$0xff]  ;;  %v1752_v9 = vld [vmem:[%s1723_s5] sm:$0xff]  ;;  %s418_s13 = scalar_lea.vmem [#allocation13], %s1057_s3  ;;  %s926_s25 = scalar_lea.hbm %s1843_s9, %s1076_s21 }
  0x85   : > { %1115 = vmatpush3.msra.mxu1 %v508_v1  ;;  %1104 = vmatpush3.msra.mxu0 %v423_v2  ;;  %v420_v8 = vld [vmem:[#allocation5] sm:$0xff]  ;;  %v1064_v11 = vld [vmem:[%s1836_s2] ss:$0 sm:$0xff]  ;;  %v588_v19 = vld [vmem:[#allocation10 + $0x10] sm:$0xff]  ;;  %s928_s17 = sshll.u32 %s418_s13, 4  ;;  %s915_s4 = scalar_lea.sflag [#allocation4], %s1717_s1  ;;  %s929_s17 = int_to_ptr.vmem [resolvable:$true] %s928_s17 }
  0x86   : > { %1116 = vmatprep.subr.mxu1 %v1506_v0  ;;  %1105 = vmatprep.subr.mxu0 %v1506_v0  ;;  %v1066_v10 = vld [vmem:[#allocation8] ss:$0 sm:$0xff]  ;;  %v587_v20 = vld [vmem:[#allocation10 + $0x8] sm:$0xff]  ;;  %v586_v21 = vld [vmem:[#allocation10] sm:$0xff]  ;;  %s1420_s5 = scalar_lea.vmem %s929_s17, 128  ;;  %p1871_p11 = scmp.ne.s32.totalorder %s1860_s24, 0 }
  0x87   : > { %1117 = vmatpush3.msra.mxu1 %v507_v3  ;;  %1106 = vmatpush3.msra.mxu0 %v422_v4  ;;  %v589_v18 = vld [vmem:[#allocation10 + $0x18] sm:$0xff]  ;;  %v1068_v30 = vld [vmem:[%s1840_s6] ss:$0 sm:$0xff]  ;;  %v830_v35 = vld [vmem:[#allocation11 + $0x10] sm:$0xff]  ;;  %p1421_p9 = scmp.ne.s32.totalorder %s929_s17, %s1420_s5  ;;  %s1508_s15 = smov [#allocation13]  }
  0x88   : > { %1118 = vmatprep.subr.mxu1 %v1506_v0  ;;  %1107 = vmatprep.subr.mxu0 %v1506_v0  ;;  %v831_v34 = vld [vmem:[#allocation11 + $0x18] sm:$0xff]  ;;  %v829_v36 = vld [vmem:[#allocation11 + $0x8] sm:$0xff]  ;;  %v828_v40 = vld [vmem:[#allocation11] sm:$0xff]  ;;  %s1424_s3 = sshll.u32 %s1508_s15, 4  ;;  %s1425_s3 = int_to_ptr.vmem [resolvable:$false] %s1424_s3 }
  0x89   : > { %1119 = vmatpush3.msra.mxu1 %v506_v5  ;;  %1108 = vmatpush3.msra.mxu0 %v421_v6  ;;  %v1073_v43 = vld [vmem:[%s1842_s8] ss:$0 sm:$0xff]  ;;  %p1422_p0 = pnand %p1421_p9, %p1871_p11  ;;  %s1426_s16 = scalar_lea.vmem %s1425_s3, 256 }
  0x8a   : > { %1120 = vmatprep.subr.mxu1 %v1506_v0  ;;  %1109 = vmatprep.subr.mxu0 %v1506_v0  ;;  %p1427_p5 = scmp.lt.s32.totalorder %s929_s17, %s1425_s3  ;;  %p1428_p8 = scmp.lt.s32.totalorder %s1426_s16, %s1420_s5 }
  0x8b   : > { %1121 = vmatpush3.msra.mxu1 %v505_v7  ;;  %1110 = vmatpush3.msra.mxu0 %v420_v8  ;;  %p1423_p13 = pneg %p1422_p0 }
  0x8c   : > { %1123 = vmatmul.mubr.msk.f32.vlgmr.msra.gmra.mxu1 %vm431_vm1, %v1752_v9  ;;  %1112 = vmatmul.mubr.msk.f32.vlgmr.msra.gmra.mxu0 %vm431_vm1, %v1752_v9  ;;  %p1429_p10 = por %p1428_p8, %p1427_p5 }
  0x8d   : > { %1136 = vmatprep.subr.mxu1 %v1506_v0  ;;  %1138 = vmatprep.mubr.msk.f32.mxu1 %vm1507_vm0, %v1506_v0 }
  0x8e   : > { %1125 = vmatprep.subr.mxu0 %v1506_v0  ;;  %1133 = vmatprep.mubr.msk.f32.mxu0 %vm1507_vm0, %v1506_v0  ;;  %p1430_p1 = pnand %p1429_p10, %p1423_p13 }
  0x8f   : > { %1126 = vmatpush3.msra.mxu0 %v589_v18 }
  0x90   : > { %1127 = vmatprep.subr.mxu0 %v1506_v0 }
  0x91   : > { %1128 = vmatpush3.msra.mxu0 %v588_v19 }
  0x92   : > { %1129 = vmatprep.subr.mxu0 %v1506_v0 }
  0x93   : > { %1130 = vmatpush3.msra.mxu0 %v587_v20 }
  0x94   : > { %1131 = vmatprep.subr.mxu0 %v1506_v0 }
  0x95   : > { %1132 = vmatpush3.msra.mxu0 %v586_v21 }
  0x96   : > { %1134 = vmatmul.mubr.msk.f32.vlgmr.msra.gmra.mxu0 %vm431_vm1, %v1752_v9  ;;  %1146 = vmatprep.subr.mxu0 %v1506_v0 }
  0x97   : > { %1154 = vmatprep.mubr.msk.f32.mxu0 %vm1507_vm0, %v1506_v0  ;;  %1147 = vmatpush3.msra.mxu0 %v831_v34 }
  0x98   : > { %1148 = vmatprep.subr.mxu0 %v1506_v0 }
  0x99   : > { %1149 = vmatpush3.msra.mxu0 %v830_v35 }
  0x9a   : > { %1150 = vmatprep.subr.mxu0 %v1506_v0 }
  0x9b   : > { %1151 = vmatpush3.msra.mxu0 %v829_v36 }
  0x9c   : > { %1152 = vmatprep.subr.mxu0 %v1506_v0 }
  0x9d   : > { %1153 = vmatpush3.msra.mxu0 %v828_v40 }
 0x14c   : > { %v582_v12 = vpop.f32.mrf.mxu1  ;;  %v501_v13 = vpop.f32.mrf.mxu0 }
 0x14d   : > { %v583_v14 = vadd.f32 %v1066_v10, %v582_v12  ;;  %v502_v15 = vadd.f32 %v1064_v11, %v501_v13 }
 0x14e   : > { %v1124_v16 = vpop.f32.mrf.mxu1  ;;  %v1113_v17 = vpop.f32.mrf.mxu0 }
 0x14f   : > { %1137 = vmatpush3.xpose.msk.msra.mxu1 %vm431_vm1, %v583_v14 }
 0x150   : > { %1141 = vmatprep.subr.mxu1 %v1506_v0 }
 0x152   : > { %1139 = vmatmul.mubr.msk.f32.vlgmr.msra.gmra.mxu1 %vm431_vm1, %v502_v15 }
 0x153   : > { %1143 = vmatprep.mubr.msk.f32.mxu1 %vm1507_vm0, %v1506_v0 }
 0x156   : > { %v663_v31 = vpop.f32.mrf.mxu0 }
 0x157   : > { %v664_v32 = vadd.f32 %v1068_v30, %v663_v31 }
 0x158   : > { %v1135_v33 = vpop.f32.mrf.mxu0 }
 0x159   : > { %1142 = vmatpush3.msra.mxu1 %v664_v32 }
 0x212   : > { %v739_v22 = vpop.f32.mrf.mxu1 }
 0x213   : > { %v744_v23 = vsel %vm743_vm2, %v739_v22, -inf }
 0x214   : > { %745 = vmax.xlane.f32.xlu0 %v744_v23  ;;  %v1140_v24 = vpop.f32.mrf.mxu1 }
 0x29d   : > { %v746_v25 = vpop.xlane.xlu0 %745 }
 0x29e   : > { %v747_v26 = vsub.f32 %v739_v22, %v746_v25 }
 0x2a0   : > { %v748_v27 = vmul.f32 1.442695, %v747_v26 }
 0x2a2   : > { %1258 = vpow2.f32 %v748_v27 }
 0x2af   : > { %v1259_v28 = vpop.eup %1258 }
 0x2b0   : > { %v750_v29 = vsel %vm743_vm2, %v1259_v28, 0.0 }
 0x2b1   : > { %751 = vadd.xlane.f32.xlu0 %v750_v29 }
 0x33a   : > { %v752_v37 = vpop.xlane.xlu0 %751 }
 0x33b   : > { %1260 = vrcp.f32 %v752_v37 }
 0x348   : > { %v1261_v38 = vpop.eup %1260 }
 0x349   : > { %v754_v39 = vmul.f32 %v1261_v38, %v1259_v28 }
 0x34b   : > { %1144 = vmatmul.mubr.msk.f32.vlgmr.msra.gmra.mxu1 %vm743_vm2, %v754_v39 }
 0x40b   : > { %v824_v41 = vpop.f32.mrf.mxu1 }
 0x40c   : > { %1155 = vmatmul.mubr.msk.f32.vlgmr.msra.gmra.mxu0 %vm431_vm1, %v824_v41 }
 0x40d   : > { %v1145_v42 = vpop.f32.mrf.mxu1 }
 0x4cc   : > { %v908_v44 = vpop.f32.mrf.mxu0 }
 0x4cd   : > { %v909_v45 = vadd.f32 %v1073_v43, %v908_v44 }
 0x4ce   : > { %v1156_v46 = vpop.f32.mrf.mxu0 }
 0x4cf   : > { %v912_v47 = vadd.f32 %v909_v45, %v1752_v9 }
 0x4d1   : > { %913 = vst.msk [vmem:[%s418_s13] sm:$0xff] %vm431_vm1, %v912_v47 }
 0x4d2   : > { %1433 = shalt.err (!%p1430_p1)
}
 0x4d3   : > { %s1434_s27 = scalar_lea.hbm %s926_s25, 128  ;;  %s1438_s23 = scalar_lea.hbm %s1843_s9, 256 }
 0x4d4   : > { %p1435_p3 = scmp.ne.s32.totalorder %s926_s25, %s1434_s27  ;;  %p1439_p6 = scmp.lt.s32.totalorder %s926_s25, %s1843_s9 }
 0x4d5   : > { %p1440_p2 = scmp.lt.s32.totalorder %s1438_s23, %s1434_s27 }
 0x4d6   : > { %p1436_p4 = pnand %p1435_p3, %p1871_p11 }
 0x4d7   : > { %p1441_p7 = por %p1440_p2, %p1439_p6 }
 0x4d8   : > { %p1437_p12 = pneg %p1436_p4 }
 0x4da   : > { %p1442_p9 = pnand %p1441_p7, %p1437_p12 }
 0x4dc   : > { %1445 = shalt.err (!%p1442_p9)
}
 0x4dd   : > { %1179 = dma.vmem_to_hbm [thread:$0]  (%p1871_p11), %s929_s17, 128, %s926_s25, %s915_s4  }
 0x4de PF: > { %s940_s21 = sand.u32 1, %s1484_s30   ;;  %p1872_p0 = scmp.ne.s32.totalorder %s1861_s28, 0 }
 0x4df   : > { %p1873_p13 = scmp.ge.s32.totalorder %s1496_s12, 2  ;;  %s941_s13 = scalar_lea.sflag [#allocation4], %s940_s21 }
 0x4e1   : > { %p1202_p5 = pnand %p1873_p13, %p1872_p0 }
 0x4e3   : > { %p1203_p8 = pneg %p1202_p5 }
 0x4e5   : > { %1479 = dma.done.wait (%p1203_p8), %s941_s13, 128  }
 0x4e6   : > { %1481 = vsyncadd (%p1203_p8), %s941_s13, 4294967168  ;;  %p25_p10 = scmp.ge.s32.totalorder %s1660_s22, 4   ;;  %s1874_s30 = smov %s1488_s10 }
 0x4e7   : > { %s1875_s10 = smov %s1492_s11  ;;  %s1876_s11 = smov %s1672_s26 }
 0x4e8   : > { %s1877_s12 = smov %s1660_s22  ;;  %27 = sbr.rel (!%p25_p10) target bundleno = 13 (0xd), region = 121 }
 0x4ed   :  { %946 = vsyncpa [#allocation3], 1 }
 0x4ee   :  { %948 = vsyncpa [#allocation3 + $0x1], 1 }
 0x4ef   :  { %949 = vsyncpa [#allocation6], 1 }
 0x4f0   :  { %950 = vsyncpa [#allocation9], 1 }
 0x4f1   :  { %951 = vsyncpa [#allocation12], 1 }
 0x4f2   :  { %952 = vsyncpa [#allocation4], 1 }
 0x4f3   :  { %954 = vsyncpa [#allocation4 + $0x1], 1 }

</bundles_post_ra>
